<compile_context>
chip_gen: v6e
topology: v6e:2x2x1
jax: 0.10.0
libtpu: 0.0.40
codegen_flags: <defaults>
</compile_context>

<pallas_src>
import functools

import jax
import jax.numpy as jnp
from jax.experimental import pallas as pl
from jax.experimental.pallas import tpu as pltpu


def _round_up(x: int, m: int) -> int:
    return ((x + m - 1) // m) * m


# ---------------------------------------------------------------------------
# Kernel
# ---------------------------------------------------------------------------
def _mlp_kernel(x_ref, w1_ref, b1_ref, w2_ref, b2_ref, wp_ref, bp_ref,
                o_ref, acc_ref):
    h_idx = pl.program_id(1)

    @pl.when(h_idx == 0)
    def _():
        # Fold the down-projection bias into the accumulator init.
        acc_ref[...] = jnp.zeros_like(acc_ref) + bp_ref[...].astype(jnp.float32)

    x = x_ref[...]                       # (bm, D), native dtype (bf16-friendly)

    # Up-projections for this H tile, f32 accumulation on the MXU.
    h1 = jnp.dot(x, w1_ref[...], preferred_element_type=jnp.float32)
    h1 = h1 + b1_ref[...].astype(jnp.float32)
    h2 = jnp.dot(x, w2_ref[...], preferred_element_type=jnp.float32)
    h2 = h2 + b2_ref[...].astype(jnp.float32)

    # SiLU gate in f32 (sigmoid goes to the EUP slot).
    gated = (h1 * jax.nn.sigmoid(h1)) * h2

    # Down-projection partial sum for this H tile.  Cast the gated activations
    # back to the input dtype so bf16 inputs keep full MXU throughput.
    acc_ref[...] += jnp.dot(gated.astype(x.dtype), wp_ref[...],
                            preferred_element_type=jnp.float32)

    @pl.when(h_idx == pl.num_programs(1) - 1)
    def _():
        o_ref[...] = acc_ref[...].astype(o_ref.dtype)


# ---------------------------------------------------------------------------
# Generation-aware tile / VMEM selection
# ---------------------------------------------------------------------------
def _tpu_vmem_and_cores():
    """Best-effort (physical VMEM bytes per TensorCore, TCs per chip)."""
    try:
        kind = jax.devices()[0].device_kind.lower()
    except Exception:  # pragma: no cover - defensive
        kind = ""
    if "v7" in kind or "7x" in kind:
        return 64 << 20, 2            # v7x: 64 MiB/TC, 2 TCs/chip
    if "v6" in kind:
        return 128 << 20, 1           # v6e
    if "v5 lite" in kind or "v5e" in kind or "v5lite" in kind:
        return 128 << 20, 1           # v5e
    # Unknown / older parts: conservative numbers that fit everywhere.
    return 64 << 20, 2


def _pick_bh(H: int, target: int) -> int:
    """Largest 128-aligned divisor of H that is <= target (or H itself)."""
    if H <= target:
        return H
    bh = (target // 128) * 128
    while bh >= 128:
        if H % bh == 0:
            return bh
        bh -= 128
    return H


def _vmem_bytes(bm: int, bh: int, D: int, itemsize: int) -> int:
    io_blocks = 2 * 2 * bm * D * itemsize            # x + out, double buffered
    acc = bm * D * 4                                 # f32 accumulator scratch
    weights = 2 * (2 * D * bh + bh * D) * itemsize   # W1/W2/Wp tiles, 2 buffers
    biases = 2 * (2 * bh + D) * itemsize
    return io_blocks + acc + weights + biases + (2 << 20)   # + headroom


def _resolve_tiles(M: int, D: int, H: int, itemsize: int,
                   block_m, block_h):
    vmem_phys, n_cores = _tpu_vmem_and_cores()
    budget = (vmem_phys // 16) * 13          # ~81%: 104 MiB (v5e/v6e), 52 MiB (v7x)
    mult = {4: 8, 2: 16, 1: 32}.get(itemsize, 8)   # sublane packing per dtype

    if block_m is None:
        block_m = 1024 if vmem_phys >= (128 << 20) else 512
    if block_h is None:
        block_h = 512

    bm = min(block_m, _round_up(M, mult))
    bm = _round_up(bm, mult)
    # 2-TC chips (v7x): keep at least two M tiles so both cores get work.
    if n_cores >= 2 and _round_up(M, bm) // bm < 2 and M > mult:
        bm = _round_up((M + 1) // 2, mult)

    bh = _pick_bh(H, block_h)

    # Shrink tiles until the double-buffered working set fits the VMEM budget.
    while _vmem_bytes(bm, bh, D, itemsize) > budget and bh > 256 and bh % 256 == 0:
        bh //= 2
    while _vmem_bytes(bm, bh, D, itemsize) > budget and bm > mult:
        bm = max(mult, _round_up(bm // 2, mult))

    vmem_limit = int(min(max(_vmem_bytes(bm, bh, D, itemsize), 32 << 20), budget))
    return bm, bh, vmem_limit


# ---------------------------------------------------------------------------
# pallas_call wrapper
# ---------------------------------------------------------------------------
@functools.partial(jax.jit, static_argnames=("bm", "bh", "vmem_limit"))
def _mlp_call(x2d, w1, b1, w2, b2, wp, bp, *, bm, bh, vmem_limit):
    M, D = x2d.shape
    H = w1.shape[1]
    itemsize = x2d.dtype.itemsize

    m_pad = _round_up(M, bm)
    if m_pad != M:
        x2d = jnp.pad(x2d, ((0, m_pad - M), (0, 0)))

    n_m = m_pad // bm
    n_h = H // bh
    grid = (n_m, n_h)

    cost = pl.CostEstimate(
        flops=6 * m_pad * D * H,                 # 2 up-proj + 1 down-proj matmuls
        transcendentals=m_pad * H,               # sigmoid
        bytes_accessed=(2 * m_pad * D * itemsize                      # x + out
                        + (w1.size + b1.size + w2.size + b2.size + wp.size)
                        * itemsize * n_m                              # per M-tile
                        + bp.size * itemsize),
    )

    out2d = pl.pallas_call(
        _mlp_kernel,
        out_shape=jax.ShapeDtypeStruct((m_pad, D), x2d.dtype),
        grid_spec=pltpu.PrefetchScalarGridSpec(
            num_scalar_prefetch=0,
            grid=grid,
            in_specs=[
                pl.BlockSpec((bm, D), lambda i, h: (i, 0)),    # x rows (reused over h)
                # Weight tiles stream every inner step; add
                # pipeline_mode=pl.Buffered(3) here if DMA is still exposed.
                pl.BlockSpec((D, bh), lambda i, h: (0, h)),    # W1 H-tile
                pl.BlockSpec((1, bh), lambda i, h: (0, h)),    # b1 H-tile
                pl.BlockSpec((D, bh), lambda i, h: (0, h)),    # W2 H-tile
                pl.BlockSpec((1, bh), lambda i, h: (0, h)),    # b2 H-tile
                pl.BlockSpec((bh, D), lambda i, h: (h, 0)),    # Wp H-tile
                pl.BlockSpec((1, D), lambda i, h: (0, 0)),     # bp (resident)
            ],
            out_specs=pl.BlockSpec((bm, D), lambda i, h: (i, 0)),  # resident over h
            scratch_shapes=[pltpu.VMEM((bm, D), jnp.float32)],     # f32 accumulator
        ),
        compiler_params=pltpu.CompilerParams(
            dimension_semantics=("parallel", "arbitrary"),
            vmem_limit_bytes=vmem_limit,
        ),
        cost_estimate=cost,
    )(x2d, w1, b1, w2, b2, wp, bp)

    return out2d[:M]


def mlp_forward(x, w1, b1, w2, b2, wp, bp, *, block_m=None, block_h=None):
    """x: [B, S, D]; weights stored (in, out); biases (1, out)."""
    B, S, D = x.shape
    H = w1.shape[1]                      # 4 * D
    M = B * S
    bm, bh, vmem_limit = _resolve_tiles(M, D, H, x.dtype.itemsize,
                                        block_m, block_h)
    out2d = _mlp_call(x.reshape(M, D), w1, b1, w2, b2, wp, bp,
                      bm=bm, bh=bh, vmem_limit=vmem_limit)
    return out2d.reshape(B, S, D)


# ---------------------------------------------------------------------------
# Params / reference
# ---------------------------------------------------------------------------
def init_params(key, dim, dtype=jnp.float32):
    """Deterministic init matching nn.Linear shapes (weights stored (in, out))."""
    hidden = dim * 4
    k1, k2, k3, k4, k5, k6 = jax.random.split(key, 6)
    s_in = 1.0 / jnp.sqrt(dim)
    s_h = 1.0 / jnp.sqrt(hidden)
    w1 = jax.random.uniform(k1, (dim, hidden), dtype, -s_in, s_in)
    b1 = jax.random.uniform(k2, (1, hidden), dtype, -s_in, s_in)
    w2 = jax.random.uniform(k3, (dim, hidden), dtype, -s_in, s_in)
    b2 = jax.random.uniform(k4, (1, hidden), dtype, -s_in, s_in)
    wp = jax.random.uniform(k5, (hidden, dim), dtype, -s_h, s_h)
    bp = jax.random.uniform(k6, (1, dim), dtype, -s_h, s_h)
    return w1, b1, w2, b2, wp, bp


def mlp_reference(x, w1, b1, w2, b2, wp, bp):
    h1 = x @ w1 + b1[0]
    h2 = x @ w2 + b2[0]
    g = (h1 * jax.nn.sigmoid(h1)) * h2
    return g @ wp + bp[0]


if __name__ == "__main__":
    # --- small demo shape consistent with the module (batch=2, seq=8, dim=32) ---
    B, S, D = 2, 8, 32
    kx, kp = jax.random.split(jax.random.PRNGKey(0))
    x = jax.random.normal(kx, (B, S, D), jnp.float32)
    params = init_params(kp, D)

    out = jax.block_until_ready(mlp_forward(x, *params))
    ref = mlp_reference(x, *params)
    assert out.shape == (B, S, D)
    assert jnp.allclose(out, ref, atol=2e-2, rtol=2e-2), "mismatch (small f32)"

    # --- larger shape exercising the tiled (parallel M, arbitrary H) grid ---
    B2, S2, D2 = 2, 128, 128
    kx2, kp2 = jax.random.split(jax.random.PRNGKey(1))
    x2 = jax.random.normal(kx2, (B2, S2, D2), jnp.float32)
    params2 = init_params(kp2, D2)
    out2 = jax.block_until_ready(mlp_forward(x2, *params2))
    ref2 = mlp_reference(x2, *params2)
    assert jnp.allclose(out2, ref2, atol=2e-2, rtol=2e-2), "mismatch (tiled f32)"

    # --- bf16 path: operands hit the MXU in bf16, accumulate in f32 ---
    xb = x2.astype(jnp.bfloat16)
    pb = tuple(p.astype(jnp.bfloat16) for p in params2)
    outb = jax.block_until_ready(mlp_forward(xb, *pb))
    refb = mlp_reference(xb.astype(jnp.float32),
                         *[p.astype(jnp.float32) for p in pb])
    assert jnp.allclose(outb.astype(jnp.float32), refb, atol=8e-2, rtol=8e-2), \
        "mismatch (bf16)"

    # --- odd row count: wrapper pads M to a tile multiple and slices back ---
    x3 = jax.random.normal(jax.random.PRNGKey(2), (2, 7, 32), jnp.float32)
    out3 = jax.block_until_ready(mlp_forward(x3, *params))
    ref3 = mlp_reference(x3, *params)
    assert jnp.allclose(out3, ref3, atol=2e-2, rtol=2e-2), "mismatch (ragged M)"

    print("KERNEL_OK")
</pallas_src>

<mosaic_0001>
module attributes {stable_mosaic.version = 11 : i64} {
  func.func @_mlp_kernel(%arg0: i32, %arg1: i32, %arg2: memref<8x32xf32, #tpu.memory_space<vmem>>, %arg3: memref<32x128xf32, #tpu.memory_space<vmem>>, %arg4: memref<1x128xf32, #tpu.memory_space<vmem>>, %arg5: memref<32x128xf32, #tpu.memory_space<vmem>>, %arg6: memref<1x128xf32, #tpu.memory_space<vmem>>, %arg7: memref<128x32xf32, #tpu.memory_space<vmem>>, %arg8: memref<1x32xf32, #tpu.memory_space<vmem>>, %arg9: memref<8x32xf32, #tpu.memory_space<vmem>>, %arg10: memref<8x32xf32, #tpu.memory_space<vmem>>) attributes {dimension_semantics = [#tpu.dimension_semantics<parallel>, #tpu.dimension_semantics<arbitrary>], iteration_bounds = array<i64: 2, 1>, scalar_prefetch = 0 : i64, scratch_operands = 1 : i64, tpu.core_type = #tpu.core_type<tc>, window_params = [{transform_indices = @transform_0, window_bounds = array<i64: 8, 32>}, {transform_indices = @transform_1, window_bounds = array<i64: 32, 128>}, {transform_indices = @transform_2, window_bounds = array<i64: 1, 128>}, {transform_indices = @transform_3, window_bounds = array<i64: 32, 128>}, {transform_indices = @transform_4, window_bounds = array<i64: 1, 128>}, {transform_indices = @transform_5, window_bounds = array<i64: 128, 32>}, {pipeline_mode = #tpu.pipeline_mode<synchronous>, transform_indices = @transform_6, window_bounds = array<i64: 1, 32>}, {transform_indices = @transform_7, window_bounds = array<i64: 8, 32>}]} {
    %c0_i32 = arith.constant 0 : i32
    %0 = arith.cmpi eq, %arg1, %c0_i32 : i32
    %1 = arith.extui %0 : i1 to i32
    %c0_i32_0 = arith.constant 0 : i32
    %2 = arith.cmpi ne, %1, %c0_i32_0 : i32
    scf.if %2 {
      %cst_21 = arith.constant 0.000000e+00 : f32
      %29 = vector.broadcast %cst_21 : f32 to vector<8x32xf32>
      %c0_22 = arith.constant 0 : index
      %c0_23 = arith.constant 0 : index
      %30 = vector.load %arg8[%c0_22, %c0_23] : memref<1x32xf32, #tpu.memory_space<vmem>>, vector<1x32xf32>
      %31 = vector.broadcast %30 : vector<1x32xf32> to vector<8x32xf32>
      %32 = arith.addf %29, %31 : vector<8x32xf32>
      %c0_24 = arith.constant 0 : index
      %c0_25 = arith.constant 0 : index
      %33 = vector.load %arg10[%c0_24, %c0_25] : memref<8x32xf32, #tpu.memory_space<vmem>>, vector<8x32xf32>
      tpu.vector_store %arg10[%c0_24, %c0_25], %32 {strides = array<i32>} : memref<8x32xf32, #tpu.memory_space<vmem>>, vector<8x32xf32>,
    } else {
    }
    %c0 = arith.constant 0 : index
    %c0_1 = arith.constant 0 : index
    %3 = vector.load %arg2[%c0, %c0_1] : memref<8x32xf32, #tpu.memory_space<vmem>>, vector<8x32xf32>
    %c0_2 = arith.constant 0 : index
    %c0_3 = arith.constant 0 : index
    %4 = vector.load %arg3[%c0_2, %c0_3] : memref<32x128xf32, #tpu.memory_space<vmem>>, vector<32x128xf32>
    %cst = arith.constant dense<0.000000e+00> : vector<8x128xf32>
    %5 = tpu.matmul %3, %4, %cst {dimension_numbers = #tpu.dot_dimension_numbers<[1], [0], [0], [1], [0, 0, 1, 1], [], []>} : vector<8x32xf32>, vector<32x128xf32>, vector<8x128xf32> -> vector<8x128xf32>
    %c0_4 = arith.constant 0 : index
    %c0_5 = arith.constant 0 : index
    %6 = vector.load %arg4[%c0_4, %c0_5] : memref<1x128xf32, #tpu.memory_space<vmem>>, vector<1x128xf32>
    %7 = vector.broadcast %6 : vector<1x128xf32> to vector<8x128xf32>
    %8 = arith.addf %5, %7 : vector<8x128xf32>
    %c0_6 = arith.constant 0 : index
    %c0_7 = arith.constant 0 : index
    %9 = vector.load %arg5[%c0_6, %c0_7] : memref<32x128xf32, #tpu.memory_space<vmem>>, vector<32x128xf32>
    %cst_8 = arith.constant dense<0.000000e+00> : vector<8x128xf32>
    %10 = tpu.matmul %3, %9, %cst_8 {dimension_numbers = #tpu.dot_dimension_numbers<[1], [0], [0], [1], [0, 0, 1, 1], [], []>} : vector<8x32xf32>, vector<32x128xf32>, vector<8x128xf32> -> vector<8x128xf32>
    %c0_9 = arith.constant 0 : index
    %c0_10 = arith.constant 0 : index
    %11 = vector.load %arg6[%c0_9, %c0_10] : memref<1x128xf32, #tpu.memory_space<vmem>>, vector<1x128xf32>
    %12 = vector.broadcast %11 : vector<1x128xf32> to vector<8x128xf32>
    %13 = arith.addf %10, %12 : vector<8x128xf32>
    %14 = arith.negf %8 : vector<8x128xf32>
    %15 = math.exp %14 : vector<8x128xf32>
    %cst_11 = arith.constant 1.000000e+00 : f32
    %16 = vector.broadcast %cst_11 : f32 to vector<8x128xf32>
    %17 = arith.addf %16, %15 : vector<8x128xf32>
    %18 = arith.divf %16, %17 : vector<8x128xf32>
    %19 = arith.mulf %8, %18 : vector<8x128xf32>
    %20 = arith.mulf %19, %13 : vector<8x128xf32>
    %c0_12 = arith.constant 0 : index
    %c0_13 = arith.constant 0 : index
    %21 = vector.load %arg10[%c0_12, %c0_13] : memref<8x32xf32, #tpu.memory_space<vmem>>, vector<8x32xf32>
    %c0_14 = arith.constant 0 : index
    %c0_15 = arith.constant 0 : index
    %22 = vector.load %arg7[%c0_14, %c0_15] : memref<128x32xf32, #tpu.memory_space<vmem>>, vector<128x32xf32>
    %cst_16 = arith.constant dense<0.000000e+00> : vector<8x32xf32>
    %23 = tpu.matmul %20, %22, %cst_16 {dimension_numbers = #tpu.dot_dimension_numbers<[1], [0], [0], [1], [0, 0, 1, 1], [], []>} : vector<8x128xf32>, vector<128x32xf32>, vector<8x32xf32> -> vector<8x32xf32>
    %24 = arith.addf %21, %23 : vector<8x32xf32>
    %c0_17 = arith.constant 0 : index
    %c0_18 = arith.constant 0 : index
    %25 = vector.load %arg10[%c0_17, %c0_18] : memref<8x32xf32, #tpu.memory_space<vmem>>, vector<8x32xf32>
    tpu.vector_store %arg10[%c0_17, %c0_18], %24 {strides = array<i32>} : memref<8x32xf32, #tpu.memory_space<vmem>>, vector<8x32xf32>,
    %c0_i32_19 = arith.constant 0 : i32
    %26 = arith.cmpi eq, %arg1, %c0_i32_19 : i32
    %27 = arith.extui %26 : i1 to i32
    %c0_i32_20 = arith.constant 0 : i32
    %28 = arith.cmpi ne, %27, %c0_i32_20 : i32
    scf.if %28 {
      %c0_21 = arith.constant 0 : index
      %c0_22 = arith.constant 0 : index
      %29 = vector.load %arg10[%c0_21, %c0_22] : memref<8x32xf32, #tpu.memory_space<vmem>>, vector<8x32xf32>
      %c0_23 = arith.constant 0 : index
      %c0_24 = arith.constant 0 : index
      %30 = vector.load %arg9[%c0_23, %c0_24] : memref<8x32xf32, #tpu.memory_space<vmem>>, vector<8x32xf32>
      tpu.vector_store %arg9[%c0_23, %c0_24], %29 {strides = array<i32>} : memref<8x32xf32, #tpu.memory_space<vmem>>, vector<8x32xf32>,
    } else {
    }
    return
  }
  func.func @transform_0(%arg0: i32, %arg1: i32) -> (i32, i32) {
    %c0_i32 = arith.constant 0 : i32
    %c0_i32_0 = arith.constant 0 : i32
    return %arg0, %c0_i32 : i32, i32
  }
  func.func @transform_1(%arg0: i32, %arg1: i32) -> (i32, i32) {
    %c0_i32 = arith.constant 0 : i32
    %c0_i32_0 = arith.constant 0 : i32
    return %c0_i32, %arg1 : i32, i32
  }
  func.func @transform_2(%arg0: i32, %arg1: i32) -> (i32, i32) {
    %c0_i32 = arith.constant 0 : i32
    %c0_i32_0 = arith.constant 0 : i32
    return %c0_i32, %arg1 : i32, i32
  }
  func.func @transform_3(%arg0: i32, %arg1: i32) -> (i32, i32) {
    %c0_i32 = arith.constant 0 : i32
    %c0_i32_0 = arith.constant 0 : i32
    return %c0_i32, %arg1 : i32, i32
  }
  func.func @transform_4(%arg0: i32, %arg1: i32) -> (i32, i32) {
    %c0_i32 = arith.constant 0 : i32
    %c0_i32_0 = arith.constant 0 : i32
    return %c0_i32, %arg1 : i32, i32
  }
  func.func @transform_5(%arg0: i32, %arg1: i32) -> (i32, i32) {
    %c0_i32 = arith.constant 0 : i32
    %c0_i32_0 = arith.constant 0 : i32
    return %arg1, %c0_i32 : i32, i32
  }
  func.func @transform_6(%arg0: i32, %arg1: i32) -> (i32, i32) {
    %c0_i32 = arith.constant 0 : i32
    %c0_i32_0 = arith.constant 0 : i32
    %c0_i32_1 = arith.constant 0 : i32
    return %c0_i32, %c0_i32_0 : i32, i32
  }
  func.func @transform_7(%arg0: i32, %arg1: i32) -> (i32, i32) {
    %c0_i32 = arith.constant 0 : i32
    %c0_i32_0 = arith.constant 0 : i32
    return %arg0, %c0_i32 : i32, i32
  }
}

</mosaic_0001>

<bundles_post_ra>
// kernel: _mlp_call.1
= control target key start
LH: loop header
LB: loop body
LE: loop exit
PB: predicated region body
PF: predicated region fallthrough
CT: control target
= control target key end

     0   :  { %12 = vsyncpa [#allocation4], 0  ;;  %s1312_s0 = inlined_call_operand.vmem [shape: f32[16,32], index: 0, kind: input, shape index: {}]   ;;  %s1313_s1 = inlined_call_operand.vmem [shape: f32[32,128], index: 1, kind: input, shape index: {}]   ;;  %s1314_s2 = inlined_call_operand.vmem [shape: f32[1,128], index: 2, kind: input, shape index: {}]   ;;  %s1315_s3 = inlined_call_operand.vmem [shape: f32[32,128], index: 3, kind: input, shape index: {}]   ;;  %s1316_s4 = inlined_call_operand.vmem [shape: f32[1,128], index: 4, kind: input, shape index: {}]   ;;  %s1317_s5 = inlined_call_operand.vmem [shape: f32[128,32], index: 5, kind: input, shape index: {}]   ;;  %s1318_s6 = inlined_call_operand.vmem [shape: f32[1,32], index: 6, kind: input, shape index: {}]   ;;  %s1319_s7 = inlined_call_operand.hbm [shape: f32[16,32], index: 7, kind: output, shape index: {}]  }
   0x1   :  { %14 = vsyncpa [#allocation4 + $0x1], 0  ;;  %s1091_s24 = smov 0   ;;  %s1093_s25 = smov 0  }
   0x2   :  { %s1095_s26 = smov 0   ;;  %s1097_s27 = smov 0  }
   0x3   :  { %s1099_s28 = smov 0   ;;  %s1101_s29 = smov 0  }
   0x4 LB: > { %s803_s30 = sadd.s32 4294967295, %s1046_s29   ;;  %s804_s8 = sadd.s32 4294967294, %s1046_s29   ;;  %s1046_s29 = sphi %s1101_s29, %s20_s29   ;;  %s1042_s28 = sphi %s1099_s28, %s1326_s28   ;;  %s1038_s27 = sphi %s1097_s27, %s1325_s27   ;;  %s1034_s26 = sphi %s1095_s26, %s1324_s26   ;;  %s1030_s25 = sphi %s1093_s25, %s1323_s25   ;;  %s1026_s24 = sphi %s1091_s24, %s1322_s24  }
   0x5   : > { %s32_s9 = sadd.s32 1, %s1042_s28  ;;  %s216_s10 = sadd.s32 1, %s1034_s26 }
   0x6   : > { %p34_p0 = scmp.ge.s32.totalorder %s32_s9, 2  ;;  %p226_p1 = scmp.ne.s32.totalorder %s1034_s26, %s1030_s25 }
   0x7   : > { %p227_p2 = scmp.eq.s32.totalorder %s803_s30, 1  ;;  %p232_p3 = scmp.ne.s32.totalorder %s1030_s25, %s1026_s24 }
   0x8   : > { %s1328_s9 = smov (%p34_p0, %s32_s9), 0  ;;  %p233_p5 = scmp.eq.s32.totalorder %s804_s8, 1 }
   0x9   : > { %p1131_p4 = por %p227_p2, %p226_p1  ;;  %s213_s12 = ssub.s32 %s1042_s28, %s1328_s9 }
   0xa   : > { %p812_p6 = scmp.ge.s32.totalorder %s1046_s29, 1  ;;  %p214_p7 = scmp.eq.s32.totalorder %s213_s12, 0 }
   0xb   : > { %p1138_p8 = por %p233_p5, %p232_p3  ;;  %p296_p9 = scmp.lt.s32.totalorder %s1046_s29, 3 }
   0xc   : > { %s1144_s14 = scalar_select %p214_p7, %s1034_s26, %s216_s10  }
   0xd   : > { %p297_p10 = pnand %p812_p6, %p296_p9 }
   0xe   : > { %p346_p11 = scmp.lt.s32.totalorder (!%p297_p10), %s1038_s27, 1  ;;  %s822_s30 = sshll.u32 (!%p297_p10), %s1038_s27, 7 }
   0xf   : > { %300 = sbr.rel (%p297_p10) target bundleno = 476 (0x1dc), region = 48  ;;  %s1271_s16 = scalar_lea.hbm (!%p297_p10), %s1319_s7, %s822_s30 }
  0x14   : > { %v388_v0 = vld [vmem:[%s1313_s1 + $0x18] sm:$0xff]  ;;  %v1048_v1 = vmov 0.0   ;;  %v387_v2 = vld [vmem:[%s1313_s1 + $0x10] sm:$0xff]  ;;  %vm1049_vm0 = vmmov 0   ;;  %s347_s19 = scalar_select %p346_p11, %s1038_s27, 1  ;;  %v386_v3 = vld [vmem:[%s1313_s1 + $0x8] sm:$0xff] }
  0x15   : > { %852 = vmatprep.subr.mxu1 %v1048_v1  ;;  %860 = vmatprep.mubr.msk.f32.mxu1 %vm1049_vm0, %v1048_v1  ;;  %v385_v4 = vld [vmem:[%s1313_s1] sm:$0xff]  ;;  %vm382_vm1 = vcmask 261120   ;;  %v473_v6 = vld [vmem:[%s1315_s3 + $0x18] sm:$0xff]  ;;  %v472_v7 = vld [vmem:[%s1315_s3 + $0x10] sm:$0xff] }
  0x16   : > { %853 = vmatpush3.msra.mxu1 %v388_v0  ;;  %874 = vmatprep.subr.mxu0 %v1048_v1  ;;  %s814_s22 = sshll.u32 %s347_s19, 3  ;;  %v471_v8 = vld [vmem:[%s1315_s3 + $0x8] sm:$0xff]  ;;  %v470_v9 = vld [vmem:[%s1315_s3] sm:$0xff]  ;;  %v575_v10 = vld [vmem:[%s1317_s5 + $0x78] sm:$0xff]  ;;  %s1050_s19 = smov [#allocation3]  }
  0x17   : > { %854 = vmatprep.subr.mxu1 %v1048_v1  ;;  %906 = vmatprep.mubr.msk.f32.mxu0 %vm1049_vm0, %v1048_v1  ;;  %s349_s12 = scalar_lea.vmem %s1312_s0, %s814_s22  ;;  %v574_v11 = vld [vmem:[%s1317_s5 + $0x70] sm:$0xff]  ;;  %v573_v12 = vld [vmem:[%s1317_s5 + $0x68] sm:$0xff]  ;;  %v572_v13 = vld [vmem:[%s1317_s5 + $0x60] sm:$0xff]  ;;  %s343_s22 = sand.u32 1, %s1030_s25  }
  0x18   : > { %855 = vmatpush3.msra.mxu1 %v387_v2  ;;  %v384_v5 = vld [vmem:[%s349_s12] sm:$0xff]  ;;  %875 = vmatpush3.msra.mxu0 %v575_v10  ;;  %v571_v14 = vld [vmem:[%s1317_s5 + $0x58] sm:$0xff]  ;;  %v570_v15 = vld [vmem:[%s1317_s5 + $0x50] sm:$0xff]  ;;  %s813_s23 = sshll.u32 %s343_s22, 3  ;;  %s654_s17 = scalar_lea.sflag [#allocation4], %s343_s22 }
  0x19   : > { %856 = vmatprep.subr.mxu1 %v1048_v1  ;;  %876 = vmatprep.subr.mxu0 %v1048_v1  ;;  %v569_v16 = vld [vmem:[%s1317_s5 + $0x48] sm:$0xff]  ;;  %v568_v17 = vld [vmem:[%s1317_s5 + $0x40] sm:$0xff]  ;;  %v567_v18 = vld [vmem:[%s1317_s5 + $0x38] sm:$0xff]  ;;  %s345_s8 = scalar_lea.vmem [#allocation3], %s813_s23  ;;  %s974_s20 = sshll.u32 %s1050_s19, 4  ;;  %s975_s20 = int_to_ptr.vmem [resolvable:$false] %s974_s20 }
  0x1a   : > { %857 = vmatpush3.msra.mxu1 %v386_v3  ;;  %877 = vmatpush3.msra.mxu0 %v574_v11  ;;  %v566_v19 = vld [vmem:[%s1317_s5 + $0x30] sm:$0xff]  ;;  %v565_v20 = vld [vmem:[%s1317_s5 + $0x28] sm:$0xff]  ;;  %v564_v21 = vld [vmem:[%s1317_s5 + $0x20] sm:$0xff]  ;;  %s667_s10 = sshll.u32 %s345_s8, 4  ;;  %s976_s27 = scalar_lea.vmem %s975_s20, 256  ;;  %s668_s10 = int_to_ptr.vmem [resolvable:$true] %s667_s10 }
  0x1b   : > { %858 = vmatprep.subr.mxu1 %v1048_v1  ;;  %878 = vmatprep.subr.mxu0 %v1048_v1  ;;  %v563_v22 = vld [vmem:[%s1317_s5 + $0x18] sm:$0xff]  ;;  %v562_v23 = vld [vmem:[%s1317_s5 + $0x10] sm:$0xff]  ;;  %v561_v24 = vld [vmem:[%s1317_s5 + $0x8] sm:$0xff]  ;;  %s970_s18 = scalar_lea.vmem %s668_s10, 128  ;;  %p977_p1 = scmp.lt.s32.totalorder %s668_s10, %s975_s20 }
  0x1c   : > { %859 = vmatpush3.msra.mxu1 %v385_v4  ;;  %879 = vmatpush3.msra.mxu0 %v573_v12  ;;  %v560_v25 = vld [vmem:[%s1317_s5] sm:$0xff]  ;;  %p971_p12 = scmp.ne.s32.totalorder %s668_s10, %s970_s18  ;;  %p978_p2 = scmp.lt.s32.totalorder %s976_s27, %s970_s18 }
  0x1d   : > { %861 = vmatmul.mubr.msk.f32.vlgmr.msra.gmra.mxu1 %vm382_vm1, %v384_v5  ;;  %863 = vmatprep.subr.mxu1 %v1048_v1  ;;  %v815_v26 = vld [vmem:[%s1318_s6] ss:$0 sm:$0xff] }
  0x1e   : > { %864 = vmatpush3.msra.mxu1 %v473_v6  ;;  %871 = vmatprep.mubr.msk.f32.mxu1 %vm1049_vm0, %v1048_v1  ;;  %383 = vst.msk [vmem:[#allocation2] sm:$0xff] %vm382_vm1, %v815_v26  ;;  %v816_v27 = vld [vmem:[%s1314_s2] ss:$0 sm:$0xff]  ;;  %p972_p13 = pnand %p971_p12, %p1131_p4  ;;  %p979_p3 = por %p978_p2, %p977_p1 }
  0x1f   : > { %865 = vmatprep.subr.mxu1 %v1048_v1  ;;  %880 = vmatprep.subr.mxu0 %v1048_v1  ;;  %v818_v36 = vld [vmem:[%s1316_s4] ss:$0 sm:$0xff] }
  0x20   : > { %866 = vmatpush3.msra.mxu1 %v472_v7  ;;  %881 = vmatpush3.msra.mxu0 %v572_v13  ;;  %p973_p0 = pneg %p972_p13 }
  0x21   : > { %867 = vmatprep.subr.mxu1 %v1048_v1  ;;  %882 = vmatprep.subr.mxu0 %v1048_v1 }
  0x22   : > { %868 = vmatpush3.msra.mxu1 %v471_v8  ;;  %883 = vmatpush3.msra.mxu0 %v571_v14  ;;  %p980_p5 = pnand %p979_p3, %p973_p0 }
  0x23   : > { %869 = vmatprep.subr.mxu1 %v1048_v1  ;;  %884 = vmatprep.subr.mxu0 %v1048_v1 }
  0x24   : > { %870 = vmatpush3.msra.mxu1 %v470_v9  ;;  %885 = vmatpush3.msra.mxu0 %v570_v15 }
  0x25   : > { %872 = vmatmul.mubr.msk.f32.vlgmr.msra.gmra.mxu1 %vm382_vm1, %v384_v5  ;;  %886 = vmatprep.subr.mxu0 %v1048_v1  ;;  %v559_v41 = vld [vmem:[#allocation2] sm:$0xff] }
  0x26   : > { %887 = vmatpush3.msra.mxu0 %v569_v16 }
  0x27   : > { %888 = vmatprep.subr.mxu0 %v1048_v1 }
  0x28   : > { %889 = vmatpush3.msra.mxu0 %v568_v17 }
  0x29   : > { %890 = vmatprep.subr.mxu0 %v1048_v1 }
  0x2a   : > { %891 = vmatpush3.msra.mxu0 %v567_v18 }
  0x2b   : > { %892 = vmatprep.subr.mxu0 %v1048_v1 }
  0x2c   : > { %893 = vmatpush3.msra.mxu0 %v566_v19 }
  0x2d   : > { %894 = vmatprep.subr.mxu0 %v1048_v1 }
  0x2e   : > { %895 = vmatpush3.msra.mxu0 %v565_v20 }
  0x2f   : > { %896 = vmatprep.subr.mxu0 %v1048_v1 }
  0x30   : > { %897 = vmatpush3.msra.mxu0 %v564_v21 }
  0x31   : > { %898 = vmatprep.subr.mxu0 %v1048_v1 }
  0x32   : > { %899 = vmatpush3.msra.mxu0 %v563_v22 }
  0x33   : > { %900 = vmatprep.subr.mxu0 %v1048_v1 }
  0x34   : > { %901 = vmatpush3.msra.mxu0 %v562_v23 }
  0x35   : > { %902 = vmatprep.subr.mxu0 %v1048_v1 }
  0x36   : > { %903 = vmatpush3.msra.mxu0 %v561_v24 }
  0x37   : > { %904 = vmatprep.subr.mxu0 %v1048_v1 }
  0x38   : > { %905 = vmatpush3.msra.mxu0 %v560_v25 }
  0xdd   : > { %v466_v28 = vpop.f32.mrf.mxu1 }
  0xde   : > { %v467_v29 = vadd.f32 %v816_v27, %v466_v28 }
  0xdf   : > { %v862_v30 = vpop.f32.mrf.mxu1 }
  0xe0   : > { %v820_v31 = vmul.f32 -1.442695, %v467_v29 }
  0xe2   : > { %966 = vpow2.f32 %v820_v31 }
  0xe5   : > { %v547_v32 = vpop.f32.mrf.mxu1 }
  0xe6   : > { %v548_v37 = vadd.f32 %v818_v36, %v547_v32 }
  0xe7   : > { %v873_v33 = vpop.f32.mrf.mxu1 }
  0xef   : > { %v967_v34 = vpop.eup %966 }
  0xf0   : > { %v554_v35 = vadd.f32 1.0, %v967_v34 }
  0xf2   : > { %968 = vrcp.f32 %v554_v35 }
  0xff   : > { %v969_v38 = vpop.eup %968 }
 0x100   : > { %v557_v39 = vmul.f32 %v969_v38, %v467_v29 }
 0x102   : > { %v558_v40 = vmul.f32 %v557_v39, %v548_v37 }
 0x104   : > { %907 = vmatmul.mubr.f32.vlgmr.msra.gmra.mxu0 %v558_v40 }
 0x1c4   : > { %v642_v42 = vpop.f32.mrf.mxu0 }
 0x1c5   : > { %v646_v43 = vadd.f32 %v642_v42, %v559_v41 }
 0x1c6   : > { %v908_v44 = vpop.f32.mrf.mxu0 }
 0x1c7   : > { %647 = vst.msk [vmem:[#allocation2] sm:$0xff] %vm382_vm1, %v646_v43 }
 0x1ce   : > { %v651_v45 = vld [vmem:[#allocation2] sm:$0xff] }
 0x1cf   : > { %652 = vst.msk [vmem:[%s345_s8] sm:$0xff] %vm382_vm1, %v651_v45 }
 0x1d0   : > { %983 = shalt.err (!%p980_p5)
}
 0x1d1   : > { %s984_s21 = scalar_lea.hbm %s1271_s16, 128  ;;  %s988_s30 = scalar_lea.hbm %s1319_s7, 256 }
 0x1d2   : > { %p985_p6 = scmp.ne.s32.totalorder %s1271_s16, %s984_s21  ;;  %p989_p10 = scmp.lt.s32.totalorder %s1271_s16, %s1319_s7 }
 0x1d3   : > { %p990_p11 = scmp.lt.s32.totalorder %s988_s30, %s984_s21 }
 0x1d4   : > { %p986_p7 = pnand %p985_p6, %p1131_p4 }
 0x1d5   : > { %p991_p12 = por %p990_p11, %p989_p10 }
 0x1d6   : > { %p987_p9 = pneg %p986_p7 }
 0x1d8   : > { %p992_p13 = pnand %p991_p12, %p987_p9 }
 0x1da   : > { %995 = shalt.err (!%p992_p13)
}
 0x1db   : > { %909 = dma.vmem_to_hbm [thread:$0]  (%p1131_p4), %s668_s10, 128, %s1271_s16, %s654_s17  }
 0x1dc PF: > { %p915_p0 = scmp.ge.s32.totalorder %s1046_s29, 2  ;;  %s679_s15 = sand.u32 1, %s1026_s24  }
 0x1dd   : > { %s680_s18 = scalar_lea.sflag [#allocation4], %s679_s15 }
 0x1de   : > { %p912_p1 = pnand %p915_p0, %p1138_p8 }
 0x1e0   : > { %p913_p2 = pneg %p912_p1 }
 0x1e2   : > { %1021 = dma.done.wait (%p913_p2), %s680_s18, 128  }
 0x1e3   : > { %1023 = vsyncadd (%p913_p2), %s680_s18, 4294967168  ;;  %s20_s29 = sadd.s32 1, %s1046_s29   ;;  %s1322_s24 = smov %s1030_s25 }
 0x1e4   : > { %p17_p3 = scmp.ge.s32.totalorder %s20_s29, 4   ;;  %s1323_s25 = smov %s1034_s26 }
 0x1e5   : > { %s1324_s26 = smov %s1144_s14  ;;  %s1325_s27 = smov %s1042_s28 }
 0x1e6   : > { %s1326_s28 = smov %s1328_s9  ;;  %19 = sbr.rel (!%p17_p3) target bundleno = 4 (0x4), region = 106 }
 0x1eb   :  { %685 = vsyncpa [#allocation4], 1 }
 0x1ec   :  { %687 = vsyncpa [#allocation4 + $0x1], 1 }

</bundles_post_ra>
